<compile_context>
chip_gen: v7x
topology: tpu7x:2x2x1
jax: 0.10.0
libtpu: 0.0.40
codegen_flags: <defaults>
</compile_context>

<pallas_src>
import functools

import jax
import jax.numpy as jnp
from jax.experimental import pallas as pl
from jax.experimental.pallas import tpu as pltpu

_LANE = 128
_SUBLANE = 8


def _round_up(x, m):
    return (x + m - 1) // m * m


def _vmem_capacity():
    """Physical VMEM bytes of the local TPU (fallback: v7x-safe 64 MiB)."""
    try:
        info = pltpu.get_tpu_info()
        cap = int(getattr(info, "vmem_capacity_bytes", 0) or 0)
        if cap > 0:
            return cap
    except Exception:
        pass
    return 64 << 20


def _pick_tk(k_p, rows_p, lanes_p, itemsize, budget_bytes):
    """Largest 128-multiple K chunk whose double-buffered bilinear slab fits."""
    for cand in (1024, 512, 256, 128):
        if k_p % cand == 0 and 2 * itemsize * rows_p * cand * lanes_p <= budget_bytes:
            return cand
    # TODO(synk): chunk the j (lane) axis of the bilinear weight (extra grid
    # axis / inner pipeline) when even a 128-column chunk exceeds the budget.
    raise ValueError(
        "Bilinear weight chunk (128 x %d x %d x %dB, double-buffered) exceeds "
        "the VMEM budget (%d B); j-axis chunking is not implemented."
        % (rows_p, lanes_p, itemsize, budget_bytes))


def _pick_tile_b(batch, i_p, j_p, k1_p, k2_p, vmem_cap):
    """Batch tile: target 256 rows, bounded by batch and tile_b-scaled VMEM."""
    per_row = 4 * (2 * (i_p + j_p) + 3 * (k1_p + k2_p))
    cap_rows = max(_SUBLANE, (int(0.25 * vmem_cap) // per_row) // _SUBLANE * _SUBLANE)
    tb = min(256, cap_rows, _round_up(batch, _SUBLANE))
    return max(_SUBLANE, tb // _SUBLANE * _SUBLANE)


def _make_kernel(tile_b, tk1, tk2, nk1, nk2, wdtype):
    def _bilinear_chunk(x_a, x_b_f, wz_ref, tk):
        """z[:, kk] = sum_j (x_a @ wz_ref[kk])[:, j] * x_b_f[:, j], kk < tk."""
        lane_ids = jax.lax.broadcasted_iota(jnp.int32, (1, tk), 1)

        def body(kk, z):
            slab = wz_ref[kk]                                     # [rows_p, lanes_p]
            part = jnp.dot(x_a, slab, preferred_element_type=jnp.float32)
            red = jnp.sum(part * x_b_f, axis=1, keepdims=True)    # [tile_b, 1]
            return z + red * (lane_ids == kk).astype(jnp.float32)

        return jax.lax.fori_loop(0, tk, body,
                                 jnp.zeros((tile_b, tk), jnp.float32))

    def kernel(x1_ref, x2_ref,
               wh1_ref, bh1_ref, wz1_ref, bz1_ref, wo1_ref, bo1_ref,
               wh2_ref, bh2_ref, wz2_ref, bz2_ref, wo2_ref, bo2_ref,
               o1_ref, o2_ref, o1_acc, o2_acc):
        k = pl.program_id(1)
        nk = pl.num_programs(1)

        @pl.when(k == 0)
        def _():
            o1_acc[...] = jnp.zeros_like(o1_acc)
            o2_acc[...] = jnp.zeros_like(o2_acc)

        x1_w = x1_ref[...]                       # [tile_b, i_p] (stream dtype)
        x2_w = x2_ref[...]                       # [tile_b, j_p]
        x1_f = x1_w.astype(jnp.float32)
        x2_f = x2_w.astype(jnp.float32)

        # ---------------- modality 1 ----------------
        @pl.when(k < nk1)
        def _():
            col0 = pl.multiple_of(k * tk1, _LANE)
            h1 = jnp.dot(x1_w, wh1_ref[...], preferred_element_type=jnp.float32)
            h1 = jnp.maximum(h1 + bh1_ref[:, pl.ds(col0, tk1)], 0.0)
            z1 = _bilinear_chunk(x1_w, x2_f, wz1_ref, tk1)
            z1 = z1 + bz1_ref[:, pl.ds(col0, tk1)]
            gated = (jax.nn.sigmoid(z1) * h1).astype(wdtype)
            o1_acc[...] += jnp.dot(gated, wo1_ref[...],
                                   preferred_element_type=jnp.float32)

        # ---------------- modality 2 (mirrored) ----------------
        @pl.when(k < nk2)
        def _():
            col0 = pl.multiple_of(k * tk2, _LANE)
            h2 = jnp.dot(x2_w, wh2_ref[...], preferred_element_type=jnp.float32)
            h2 = jnp.maximum(h2 + bh2_ref[:, pl.ds(col0, tk2)], 0.0)
            z2 = _bilinear_chunk(x2_w, x1_f, wz2_ref, tk2)
            z2 = z2 + bz2_ref[:, pl.ds(col0, tk2)]
            gated = (jax.nn.sigmoid(z2) * h2).astype(wdtype)
            o2_acc[...] += jnp.dot(gated, wo2_ref[...],
                                   preferred_element_type=jnp.float32)

        # finalize: bias + ReLU (Dropout(p=0.25) is inference-mode identity)
        @pl.when(k == nk - 1)
        def _():
            o1_ref[...] = jnp.maximum(o1_acc[...] + bo1_ref[...], 0.0
                                      ).astype(o1_ref.dtype)
            o2_ref[...] = jnp.maximum(o2_acc[...] + bo2_ref[...], 0.0
                                      ).astype(o2_ref.dtype)

    return kernel


def prepare_params(params, weight_dtype=jnp.bfloat16):
    """One-time conversion of PyTorch-layout params into padded kernel layout."""
    K1, I = params["wh1"].shape          # nn.Linear weight is [out, in]
    K2, J = params["wh2"].shape
    i_p, j_p = _round_up(I, _LANE), _round_up(J, _LANE)
    k1_p, k2_p = _round_up(K1, _LANE), _round_up(K2, _LANE)

    vmem_cap = _vmem_capacity()
    itemsize = jnp.dtype(weight_dtype).itemsize
    budget = int(0.20 * vmem_cap)        # per-modality bilinear stream budget
    tk1 = _pick_tk(k1_p, i_p, j_p, itemsize, budget)
    tk2 = _pick_tk(k2_p, j_p, i_p, itemsize, budget)

    def pad2(a, r, c):
        return jnp.pad(a, ((0, r - a.shape[0]), (0, c - a.shape[1])))

    def pad_bias(b, c):
        return jnp.pad(b, (0, c - b.shape[0])).reshape(1, c).astype(jnp.float32)

    w = lambda a: jnp.asarray(a, weight_dtype)
    kp = {
        # modality 1
        "wh1": w(pad2(params["wh1"].T, i_p, k1_p)),
        "bh1": pad_bias(params["bh1"], k1_p),
        # nn.Bilinear weight [out, in1, in2]: pad only; the kernel indexes the
        # leading (out) axis per column, so no transpose / flatten is needed.
        "wz1": w(jnp.pad(params["wz1"],
                         ((0, k1_p - K1), (0, i_p - I), (0, j_p - J)))),
        "bz1": pad_bias(params["bz1"], k1_p),
        "wo1": w(pad2(params["wo1"].T, k1_p, k1_p)),
        "bo1": pad_bias(params["bo1"], k1_p),
        # modality 2
        "wh2": w(pad2(params["wh2"].T, j_p, k2_p)),
        "bh2": pad_bias(params["bh2"], k2_p),
        "wz2": w(jnp.pad(params["wz2"],
                         ((0, k2_p - K2), (0, j_p - J), (0, i_p - I)))),
        "bz2": pad_bias(params["bz2"], k2_p),
        "wo2": w(pad2(params["wo2"].T, k2_p, k2_p)),
        "bo2": pad_bias(params["bo2"], k2_p),
    }
    meta = (K1, K2, tk1, tk2, vmem_cap)
    return kp, meta


@functools.partial(jax.jit, static_argnames=("meta",))
def attn_modality_gated(x1, x2, kp, *, meta):
    K1, K2, tk1, tk2, vmem_cap = meta
    B, I = x1.shape
    _, J = x2.shape
    i_p, k1_p = kp["wh1"].shape
    j_p, k2_p = kp["wh2"].shape
    wdtype = kp["wh1"].dtype
    itemsize = jnp.dtype(wdtype).itemsize

    nk1, nk2 = k1_p // tk1, k2_p // tk2
    nk = max(nk1, nk2)

    tile_b = _pick_tile_b(B, i_p, j_p, k1_p, k2_p, vmem_cap)
    b_pad = _round_up(B, tile_b)
    nb = b_pad // tile_b

    x1p = jnp.pad(x1.astype(wdtype), ((0, b_pad - B), (0, i_p - I)))
    x2p = jnp.pad(x2.astype(wdtype), ((0, b_pad - B), (0, j_p - J)))

    def col_idx(nk_m):
        if nk_m == nk:
            return lambda b, k: (0, k)
        return lambda b, k: (0, jnp.minimum(k, nk_m - 1))

    def row3_idx(nk_m):
        if nk_m == nk:
            return lambda b, k: (k, 0, 0)
        return lambda b, k: (jnp.minimum(k, nk_m - 1), 0, 0)

    def row_idx(nk_m):
        if nk_m == nk:
            return lambda b, k: (k, 0)
        return lambda b, k: (jnp.minimum(k, nk_m - 1), 0)

    batch_idx = lambda b, k: (b, 0)
    const_idx = lambda b, k: (0, 0)

    in_specs = [
        pl.BlockSpec((tile_b, i_p), batch_idx),              # x1
        pl.BlockSpec((tile_b, j_p), batch_idx),              # x2
        pl.BlockSpec((i_p, tk1), col_idx(nk1)),              # wh1 (col chunk)
        pl.BlockSpec((1, k1_p), const_idx),                  # bh1 (resident)
        pl.BlockSpec((tk1, i_p, j_p), row3_idx(nk1)),        # wz1 (K chunk)
        pl.BlockSpec((1, k1_p), const_idx),                  # bz1 (resident)
        pl.BlockSpec((tk1, k1_p), row_idx(nk1)),             # wo1 (row chunk)
        pl.BlockSpec((1, k1_p), const_idx),                  # bo1 (resident)
        pl.BlockSpec((j_p, tk2), col_idx(nk2)),              # wh2
        pl.BlockSpec((1, k2_p), const_idx),                  # bh2
        pl.BlockSpec((tk2, j_p, i_p), row3_idx(nk2)),        # wz2
        pl.BlockSpec((1, k2_p), const_idx),                  # bz2
        pl.BlockSpec((tk2, k2_p), row_idx(nk2)),             # wo2
        pl.BlockSpec((1, k2_p), const_idx),                  # bo2
    ]
    out_specs = (
        pl.BlockSpec((tile_b, k1_p), batch_idx),
        pl.BlockSpec((tile_b, k2_p), batch_idx),
    )

    # VMEM footprint (double-buffered streams + resident biases + accumulators
    # + in-kernel temporaries), with headroom below the physical capacity.
    vmem_est = (
        2 * itemsize * tile_b * (i_p + j_p)
        + 2 * itemsize * (i_p * tk1 + j_p * tk2)
        + 2 * itemsize * (tk1 * i_p * j_p + tk2 * j_p * i_p)
        + 2 * itemsize * (tk1 * k1_p + tk2 * k2_p)
        + 2 * 4 * 3 * (k1_p + k2_p)
        + 2 * 4 * tile_b * (k1_p + k2_p)
        + 4 * tile_b * (k1_p + k2_p)
        + 4 * tile_b * (i_p + j_p + 2 * (tk1 + tk2))
    )
    vmem_limit = int(min(vmem_cap * 7 // 8, max(32 << 20, int(vmem_est * 1.4))))

    kernel = _make_kernel(tile_b, tk1, tk2, nk1, nk2, wdtype)

    o1, o2 = pl.pallas_call(
        kernel,
        out_shape=(
            jax.ShapeDtypeStruct((b_pad, k1_p), jnp.float32),
            jax.ShapeDtypeStruct((b_pad, k2_p), jnp.float32),
        ),
        grid_spec=pltpu.PrefetchScalarGridSpec(
            num_scalar_prefetch=0,
            grid=(nb, nk),
            in_specs=in_specs,
            out_specs=out_specs,
            scratch_shapes=[
                pltpu.VMEM((tile_b, k1_p), jnp.float32),   # o1 accumulator
                pltpu.VMEM((tile_b, k2_p), jnp.float32),   # o2 accumulator
            ],
        ),
        compiler_params=pltpu.CompilerParams(
            dimension_semantics=("parallel", "arbitrary"),
            vmem_limit_bytes=vmem_limit,
        ),
    )(x1p, x2p,
      kp["wh1"], kp["bh1"], kp["wz1"], kp["bz1"], kp["wo1"], kp["bo1"],
      kp["wh2"], kp["bh2"], kp["wz2"], kp["bz2"], kp["wo2"], kp["bo2"])

    return o1[:B, :K1], o2[:B, :K2]


def _reference(x1, x2, p):
    relu = lambda v: jnp.maximum(v, 0.0)
    h1 = relu(x1 @ p["wh1"].T + p["bh1"])
    z1 = jnp.einsum("ni,kij,nj->nk", x1, p["wz1"], x2) + p["bz1"]
    o1 = relu((jax.nn.sigmoid(z1) * h1) @ p["wo1"].T + p["bo1"])
    h2 = relu(x2 @ p["wh2"].T + p["bh2"])
    z2 = jnp.einsum("ni,kij,nj->nk", x2, p["wz2"], x1) + p["bz2"]
    o2 = relu((jax.nn.sigmoid(z2) * h2) @ p["wo2"].T + p["bo2"])
    return o1, o2


def _init_params(key, dim1_og, dim2_og, scale=1):
    dim1, dim2 = dim1_og // scale, dim2_og // scale
    ks = jax.random.split(key, 12)

    def u(k, shape, fan_in):
        bound = 1.0 / jnp.sqrt(float(fan_in))
        return jax.random.uniform(k, shape, jnp.float32, -bound, bound)

    return {
        # modality 1
        "wh1": u(ks[0], (dim1, dim1_og), dim1_og),
        "bh1": u(ks[1], (dim1,), dim1_og),
        "wz1": u(ks[2], (dim1, dim1_og, dim2_og), dim1_og),  # nn.Bilinear weight
        "bz1": u(ks[3], (dim1,), dim1_og),
        "wo1": u(ks[4], (dim1, dim1), dim1),
        "bo1": u(ks[5], (dim1,), dim1),
        # modality 2
        "wh2": u(ks[6], (dim2, dim2_og), dim2_og),
        "bh2": u(ks[7], (dim2,), dim2_og),
        "wz2": u(ks[8], (dim2, dim2_og, dim1_og), dim2_og),
        "bz2": u(ks[9], (dim2,), dim2_og),
        "wo2": u(ks[10], (dim2, dim2), dim2),
        "bo2": u(ks[11], (dim2,), dim2),
    }


if __name__ == "__main__":
    B, dim1_og, dim2_og = 8, 32, 16
    key = jax.random.PRNGKey(0)
    kx1, kx2, kparam = jax.random.split(key, 3)
    x1 = jax.random.normal(kx1, (B, dim1_og), jnp.float32)
    x2 = jax.random.normal(kx2, (B, dim2_og), jnp.float32)
    params = _init_params(kparam, dim1_og, dim2_og)

    # One-time weight layout prep (pad / transpose / bf16 cast), outside the
    # per-call path.
    kp, meta = prepare_params(params, weight_dtype=jnp.bfloat16)

    o1, o2 = attn_modality_gated(x1, x2, kp, meta=meta)
    jax.block_until_ready((o1, o2))

    # Reference with the same bf16 rounding applied to x / weights that the
    # kernel streams (f32 accumulation in both), so the comparison isolates
    # kernel-algorithm correctness from the chosen streaming precision.
    qp = {k: (v.astype(jnp.bfloat16).astype(jnp.float32) if k.startswith("w")
              else v) for k, v in params.items()}
    x1q = x1.astype(jnp.bfloat16).astype(jnp.float32)
    x2q = x2.astype(jnp.bfloat16).astype(jnp.float32)
    r1, r2 = _reference(x1q, x2q, qp)

    assert o1.shape == r1.shape and o2.shape == r2.shape, "shape mismatch"
    assert jnp.allclose(o1, r1, atol=2e-2, rtol=2e-2), "o1 mismatch"
    assert jnp.allclose(o2, r2, atol=2e-2, rtol=2e-2), "o2 mismatch"
    print("KERNEL_OK")
</pallas_src>

<mosaic_0001>
module attributes {stable_mosaic.version = 11 : i64} {
  func.func @kernel(%arg0: i32, %arg1: i32, %arg2: memref<8x128xbf16, #tpu.memory_space<vmem>>, %arg3: memref<8x128xbf16, #tpu.memory_space<vmem>>, %arg4: memref<128x128xbf16, #tpu.memory_space<vmem>>, %arg5: memref<1x128xf32, #tpu.memory_space<vmem>>, %arg6: memref<128x128x128xbf16, #tpu.memory_space<vmem>>, %arg7: memref<1x128xf32, #tpu.memory_space<vmem>>, %arg8: memref<128x128xbf16, #tpu.memory_space<vmem>>, %arg9: memref<1x128xf32, #tpu.memory_space<vmem>>, %arg10: memref<128x128xbf16, #tpu.memory_space<vmem>>, %arg11: memref<1x128xf32, #tpu.memory_space<vmem>>, %arg12: memref<128x128x128xbf16, #tpu.memory_space<vmem>>, %arg13: memref<1x128xf32, #tpu.memory_space<vmem>>, %arg14: memref<128x128xbf16, #tpu.memory_space<vmem>>, %arg15: memref<1x128xf32, #tpu.memory_space<vmem>>, %arg16: memref<8x128xf32, #tpu.memory_space<vmem>>, %arg17: memref<8x128xf32, #tpu.memory_space<vmem>>, %arg18: memref<8x128xf32, #tpu.memory_space<vmem>>, %arg19: memref<8x128xf32, #tpu.memory_space<vmem>>) attributes {dimension_semantics = [#tpu.dimension_semantics<parallel>, #tpu.dimension_semantics<arbitrary>], iteration_bounds = array<i64: 1, 1>, scalar_prefetch = 0 : i64, scratch_operands = 2 : i64, tpu.core_type = #tpu.core_type<tc>, window_params = [{transform_indices = @transform_0, window_bounds = array<i64: 8, 128>}, {transform_indices = @transform_1, window_bounds = array<i64: 8, 128>}, {transform_indices = @transform_2, window_bounds = array<i64: 128, 128>}, {pipeline_mode = #tpu.pipeline_mode<synchronous>, transform_indices = @transform_3, window_bounds = array<i64: 1, 128>}, {transform_indices = @transform_4, window_bounds = array<i64: 128, 128, 128>}, {pipeline_mode = #tpu.pipeline_mode<synchronous>, transform_indices = @transform_5, window_bounds = array<i64: 1, 128>}, {transform_indices = @transform_6, window_bounds = array<i64: 128, 128>}, {pipeline_mode = #tpu.pipeline_mode<synchronous>, transform_indices = @transform_7, window_bounds = array<i64: 1, 128>}, {transform_indices = @transform_8, window_bounds = array<i64: 128, 128>}, {pipeline_mode = #tpu.pipeline_mode<synchronous>, transform_indices = @transform_9, window_bounds = array<i64: 1, 128>}, {transform_indices = @transform_10, window_bounds = array<i64: 128, 128, 128>}, {pipeline_mode = #tpu.pipeline_mode<synchronous>, transform_indices = @transform_11, window_bounds = array<i64: 1, 128>}, {transform_indices = @transform_12, window_bounds = array<i64: 128, 128>}, {pipeline_mode = #tpu.pipeline_mode<synchronous>, transform_indices = @transform_13, window_bounds = array<i64: 1, 128>}, {transform_indices = @transform_14, window_bounds = array<i64: 8, 128>}, {transform_indices = @transform_15, window_bounds = array<i64: 8, 128>}]} {
    %c0_i32 = arith.constant 0 : i32
    %0 = arith.cmpi eq, %arg1, %c0_i32 : i32
    %1 = arith.extui %0 : i1 to i32
    %c0_i32_0 = arith.constant 0 : i32
    %2 = arith.cmpi ne, %1, %c0_i32_0 : i32
    scf.if %2 {
      %cst = arith.constant 0.000000e+00 : f32
      %16 = vector.broadcast %cst : f32 to vector<8x128xf32>
      %c0_9 = arith.constant 0 : index
      %c0_10 = arith.constant 0 : index
      %17 = vector.load %arg18[%c0_9, %c0_10] : memref<8x128xf32, #tpu.memory_space<vmem>>, vector<8x128xf32>
      tpu.vector_store %arg18[%c0_9, %c0_10], %16 {strides = array<i32>} : memref<8x128xf32, #tpu.memory_space<vmem>>, vector<8x128xf32>,
      %cst_11 = arith.constant 0.000000e+00 : f32
      %18 = vector.broadcast %cst_11 : f32 to vector<8x128xf32>
      %c0_12 = arith.constant 0 : index
      %c0_13 = arith.constant 0 : index
      %19 = vector.load %arg19[%c0_12, %c0_13] : memref<8x128xf32, #tpu.memory_space<vmem>>, vector<8x128xf32>
      tpu.vector_store %arg19[%c0_12, %c0_13], %18 {strides = array<i32>} : memref<8x128xf32, #tpu.memory_space<vmem>>, vector<8x128xf32>,
    } else {
    }
    %c0 = arith.constant 0 : index
    %c0_1 = arith.constant 0 : index
    %3 = vector.load %arg2[%c0, %c0_1] : memref<8x128xbf16, #tpu.memory_space<vmem>>, vector<8x128xbf16>
    %c0_2 = arith.constant 0 : index
    %c0_3 = arith.constant 0 : index
    %4 = vector.load %arg3[%c0_2, %c0_3] : memref<8x128xbf16, #tpu.memory_space<vmem>>, vector<8x128xbf16>
    %5 = arith.extf %3 : vector<8x128xbf16> to vector<8x128xf32>
    %6 = arith.extf %4 : vector<8x128xbf16> to vector<8x128xf32>
    %c1_i32 = arith.constant 1 : i32
    %7 = arith.cmpi slt, %arg1, %c1_i32 : i32
    %8 = arith.extui %7 : i1 to i32
    %c0_i32_4 = arith.constant 0 : i32
    %9 = arith.cmpi ne, %8, %c0_i32_4 : i32
    scf.if %9 {
      %c128_i32 = arith.constant 128 : i32
      %16 = arith.muli %arg1, %c128_i32 : i32
      %17 = tpu.assume_multiple %16, 128 : i32
      %c0_9 = arith.constant 0 : index
      %c0_10 = arith.constant 0 : index
      %18 = vector.load %arg4[%c0_9, %c0_10] : memref<128x128xbf16, #tpu.memory_space<vmem>>, vector<128x128xbf16>
      %cst = arith.constant dense<0.000000e+00> : vector<8x128xf32>
      %19 = tpu.matmul %3, %18, %cst {dimension_numbers = #tpu.dot_dimension_numbers<[1], [0], [0], [1], [0, 0, 1, 1], [], []>} : vector<8x128xbf16>, vector<128x128xbf16>, vector<8x128xf32> -> vector<8x128xf32>
      %c0_11 = arith.constant 0 : index
      %20 = arith.index_cast %17 : i32 to index
      %21 = vector.load %arg5[%c0_11, %20] : memref<1x128xf32, #tpu.memory_space<vmem>>, vector<1x128xf32>
      %22 = vector.broadcast %21 : vector<1x128xf32> to vector<8x128xf32>
      %23 = arith.addf %19, %22 : vector<8x128xf32>
      %cst_12 = arith.constant 0.000000e+00 : f32
      %24 = vector.broadcast %cst_12 : f32 to vector<8x128xf32>
      %25 = arith.maximumf %23, %24 : vector<8x128xf32>
      %26 = tpu.iota {dimensions = array<i32: 1>} : vector<1x128xi32>
      %cst_13 = arith.constant 0.000000e+00 : f32
      %27 = vector.broadcast %cst_13 : f32 to vector<8x128xf32>
      %c0_i32_14 = arith.constant 0 : i32
      %c128_i32_15 = arith.constant 128 : i32
      %28 = arith.addi %c0_i32_14, %c128_i32_15 : i32
      %c1_i32_16 = arith.constant 1 : i32
      %29 = scf.for %arg20 = %c0_i32_14 to %28 step %c1_i32_16 iter_args(%arg21 = %27) -> (vector<8x128xf32>)  : i32 {
        %46 = arith.index_cast %arg20 : i32 to index
        %c0_27 = arith.constant 0 : index
        %c0_28 = arith.constant 0 : index
        %47 = vector.load %arg6[%46, %c0_27, %c0_28] : memref<128x128x128xbf16, #tpu.memory_space<vmem>>, vector<1x128x128xbf16>
        %48 = vector.shape_cast %47 : vector<1x128x128xbf16> to vector<128x128xbf16>
        %cst_29 = arith.constant dense<0.000000e+00> : vector<8x128xf32>
        %49 = tpu.matmul %3, %48, %cst_29 {dimension_numbers = #tpu.dot_dimension_numbers<[1], [0], [0], [1], [0, 0, 1, 1], [], []>} : vector<8x128xbf16>, vector<128x128xbf16>, vector<8x128xf32> -> vector<8x128xf32>
        %50 = arith.mulf %49, %6 : vector<8x128xf32>
        %cst_30 = arith.constant dense<0.000000e+00> : vector<8xf32>
        %51 = vector.multi_reduction <add>, %50, %cst_30 [1] : vector<8x128xf32> to vector<8xf32>
        %52 = vector.shape_cast %51 : vector<8xf32> to vector<8x1xf32>
        %53 = vector.broadcast %arg20 : i32 to vector<1x128xi32>
        %54 = arith.cmpi eq, %26, %53 : vector<1x128xi32>
        %55 = arith.extui %54 : vector<1x128xi1> to vector<1x128xi32>
        %56 = arith.sitofp %55 : vector<1x128xi32> to vector<1x128xf32>
        %57 = vector.broadcast %52 : vector<8x1xf32> to vector<8x128xf32>
        %58 = vector.broadcast %56 : vector<1x128xf32> to vector<8x128xf32>
        %59 = arith.mulf %57, %58 : vector<8x128xf32>
        %60 = arith.addf %arg21, %59 : vector<8x128xf32>
        scf.yield %60 : vector<8x128xf32>
      }
      %c128_i32_17 = arith.constant 128 : i32
      %c0_18 = arith.constant 0 : index
      %30 = arith.index_cast %17 : i32 to index
      %31 = vector.load %arg7[%c0_18, %30] : memref<1x128xf32, #tpu.memory_space<vmem>>, vector<1x128xf32>
      %32 = vector.broadcast %31 : vector<1x128xf32> to vector<8x128xf32>
      %33 = arith.addf %29, %32 : vector<8x128xf32>
      %34 = arith.negf %33 : vector<8x128xf32>
      %35 = math.exp %34 : vector<8x128xf32>
      %cst_19 = arith.constant 1.000000e+00 : f32
      %36 = vector.broadcast %cst_19 : f32 to vector<8x128xf32>
      %37 = arith.addf %36, %35 : vector<8x128xf32>
      %38 = arith.divf %36, %37 : vector<8x128xf32>
      %39 = arith.mulf %38, %25 : vector<8x128xf32>
      %40 = arith.truncf %39 : vector<8x128xf32> to vector<8x128xbf16>
      %c0_20 = arith.constant 0 : index
      %c0_21 = arith.constant 0 : index
      %41 = vector.load %arg18[%c0_20, %c0_21] : memref<8x128xf32, #tpu.memory_space<vmem>>, vector<8x128xf32>
      %c0_22 = arith.constant 0 : index
      %c0_23 = arith.constant 0 : index
      %42 = vector.load %arg8[%c0_22, %c0_23] : memref<128x128xbf16, #tpu.memory_space<vmem>>, vector<128x128xbf16>
      %cst_24 = arith.constant dense<0.000000e+00> : vector<8x128xf32>
      %43 = tpu.matmul %40, %42, %cst_24 {dimension_numbers = #tpu.dot_dimension_numbers<[1], [0], [0], [1], [0, 0, 1, 1], [], []>} : vector<8x128xbf16>, vector<128x128xbf16>, vector<8x128xf32> -> vector<8x128xf32>
      %44 = arith.addf %41, %43 : vector<8x128xf32>
      %c0_25 = arith.constant 0 : index
      %c0_26 = arith.constant 0 : index
      %45 = vector.load %arg18[%c0_25, %c0_26] : memref<8x128xf32, #tpu.memory_space<vmem>>, vector<8x128xf32>
      tpu.vector_store %arg18[%c0_25, %c0_26], %44 {strides = array<i32>} : memref<8x128xf32, #tpu.memory_space<vmem>>, vector<8x128xf32>,
    } else {
    }
    %c1_i32_5 = arith.constant 1 : i32
    %10 = arith.cmpi slt, %arg1, %c1_i32_5 : i32
    %11 = arith.extui %10 : i1 to i32
    %c0_i32_6 = arith.constant 0 : i32
    %12 = arith.cmpi ne, %11, %c0_i32_6 : i32
    scf.if %12 {
      %c128_i32 = arith.constant 128 : i32
      %16 = arith.muli %arg1, %c128_i32 : i32
      %17 = tpu.assume_multiple %16, 128 : i32
      %c0_9 = arith.constant 0 : index
      %c0_10 = arith.constant 0 : index
      %18 = vector.load %arg10[%c0_9, %c0_10] : memref<128x128xbf16, #tpu.memory_space<vmem>>, vector<128x128xbf16>
      %cst = arith.constant dense<0.000000e+00> : vector<8x128xf32>
      %19 = tpu.matmul %4, %18, %cst {dimension_numbers = #tpu.dot_dimension_numbers<[1], [0], [0], [1], [0, 0, 1, 1], [], []>} : vector<8x128xbf16>, vector<128x128xbf16>, vector<8x128xf32> -> vector<8x128xf32>
      %c0_11 = arith.constant 0 : index
      %20 = arith.index_cast %17 : i32 to index
      %21 = vector.load %arg11[%c0_11, %20] : memref<1x128xf32, #tpu.memory_space<vmem>>, vector<1x128xf32>
      %22 = vector.broadcast %21 : vector<1x128xf32> to vector<8x128xf32>
      %23 = arith.addf %19, %22 : vector<8x128xf32>
      %cst_12 = arith.constant 0.000000e+00 : f32
      %24 = vector.broadcast %cst_12 : f32 to vector<8x128xf32>
      %25 = arith.maximumf %23, %24 : vector<8x128xf32>
      %26 = tpu.iota {dimensions = array<i32: 1>} : vector<1x128xi32>
      %cst_13 = arith.constant 0.000000e+00 : f32
      %27 = vector.broadcast %cst_13 : f32 to vector<8x128xf32>
      %c0_i32_14 = arith.constant 0 : i32
      %c128_i32_15 = arith.constant 128 : i32
      %28 = arith.addi %c0_i32_14, %c128_i32_15 : i32
      %c1_i32_16 = arith.constant 1 : i32
      %29 = scf.for %arg20 = %c0_i32_14 to %28 step %c1_i32_16 iter_args(%arg21 = %27) -> (vector<8x128xf32>)  : i32 {
        %46 = arith.index_cast %arg20 : i32 to index
        %c0_27 = arith.constant 0 : index
        %c0_28 = arith.constant 0 : index
        %47 = vector.load %arg12[%46, %c0_27, %c0_28] : memref<128x128x128xbf16, #tpu.memory_space<vmem>>, vector<1x128x128xbf16>
        %48 = vector.shape_cast %47 : vector<1x128x128xbf16> to vector<128x128xbf16>
        %cst_29 = arith.constant dense<0.000000e+00> : vector<8x128xf32>
        %49 = tpu.matmul %4, %48, %cst_29 {dimension_numbers = #tpu.dot_dimension_numbers<[1], [0], [0], [1], [0, 0, 1, 1], [], []>} : vector<8x128xbf16>, vector<128x128xbf16>, vector<8x128xf32> -> vector<8x128xf32>
        %50 = arith.mulf %49, %5 : vector<8x128xf32>
        %cst_30 = arith.constant dense<0.000000e+00> : vector<8xf32>
        %51 = vector.multi_reduction <add>, %50, %cst_30 [1] : vector<8x128xf32> to vector<8xf32>
        %52 = vector.shape_cast %51 : vector<8xf32> to vector<8x1xf32>
        %53 = vector.broadcast %arg20 : i32 to vector<1x128xi32>
        %54 = arith.cmpi eq, %26, %53 : vector<1x128xi32>
        %55 = arith.extui %54 : vector<1x128xi1> to vector<1x128xi32>
        %56 = arith.sitofp %55 : vector<1x128xi32> to vector<1x128xf32>
        %57 = vector.broadcast %52 : vector<8x1xf32> to vector<8x128xf32>
        %58 = vector.broadcast %56 : vector<1x128xf32> to vector<8x128xf32>
        %59 = arith.mulf %57, %58 : vector<8x128xf32>
        %60 = arith.addf %arg21, %59 : vector<8x128xf32>
        scf.yield %60 : vector<8x128xf32>
      }
      %c128_i32_17 = arith.constant 128 : i32
      %c0_18 = arith.constant 0 : index
      %30 = arith.index_cast %17 : i32 to index
      %31 = vector.load %arg13[%c0_18, %30] : memref<1x128xf32, #tpu.memory_space<vmem>>, vector<1x128xf32>
      %32 = vector.broadcast %31 : vector<1x128xf32> to vector<8x128xf32>
      %33 = arith.addf %29, %32 : vector<8x128xf32>
      %34 = arith.negf %33 : vector<8x128xf32>
      %35 = math.exp %34 : vector<8x128xf32>
      %cst_19 = arith.constant 1.000000e+00 : f32
      %36 = vector.broadcast %cst_19 : f32 to vector<8x128xf32>
      %37 = arith.addf %36, %35 : vector<8x128xf32>
      %38 = arith.divf %36, %37 : vector<8x128xf32>
      %39 = arith.mulf %38, %25 : vector<8x128xf32>
      %40 = arith.truncf %39 : vector<8x128xf32> to vector<8x128xbf16>
      %c0_20 = arith.constant 0 : index
      %c0_21 = arith.constant 0 : index
      %41 = vector.load %arg19[%c0_20, %c0_21] : memref<8x128xf32, #tpu.memory_space<vmem>>, vector<8x128xf32>
      %c0_22 = arith.constant 0 : index
      %c0_23 = arith.constant 0 : index
      %42 = vector.load %arg14[%c0_22, %c0_23] : memref<128x128xbf16, #tpu.memory_space<vmem>>, vector<128x128xbf16>
      %cst_24 = arith.constant dense<0.000000e+00> : vector<8x128xf32>
      %43 = tpu.matmul %40, %42, %cst_24 {dimension_numbers = #tpu.dot_dimension_numbers<[1], [0], [0], [1], [0, 0, 1, 1], [], []>} : vector<8x128xbf16>, vector<128x128xbf16>, vector<8x128xf32> -> vector<8x128xf32>
      %44 = arith.addf %41, %43 : vector<8x128xf32>
      %c0_25 = arith.constant 0 : index
      %c0_26 = arith.constant 0 : index
      %45 = vector.load %arg19[%c0_25, %c0_26] : memref<8x128xf32, #tpu.memory_space<vmem>>, vector<8x128xf32>
      tpu.vector_store %arg19[%c0_25, %c0_26], %44 {strides = array<i32>} : memref<8x128xf32, #tpu.memory_space<vmem>>, vector<8x128xf32>,
    } else {
    }
    %c0_i32_7 = arith.constant 0 : i32
    %13 = arith.cmpi eq, %arg1, %c0_i32_7 : i32
    %14 = arith.extui %13 : i1 to i32
    %c0_i32_8 = arith.constant 0 : i32
    %15 = arith.cmpi ne, %14, %c0_i32_8 : i32
    scf.if %15 {
      %c0_9 = arith.constant 0 : index
      %c0_10 = arith.constant 0 : index
      %16 = vector.load %arg18[%c0_9, %c0_10] : memref<8x128xf32, #tpu.memory_space<vmem>>, vector<8x128xf32>
      %c0_11 = arith.constant 0 : index
      %c0_12 = arith.constant 0 : index
      %17 = vector.load %arg9[%c0_11, %c0_12] : memref<1x128xf32, #tpu.memory_space<vmem>>, vector<1x128xf32>
      %18 = vector.broadcast %17 : vector<1x128xf32> to vector<8x128xf32>
      %19 = arith.addf %16, %18 : vector<8x128xf32>
      %cst = arith.constant 0.000000e+00 : f32
      %20 = vector.broadcast %cst : f32 to vector<8x128xf32>
      %21 = arith.maximumf %19, %20 : vector<8x128xf32>
      %c0_13 = arith.constant 0 : index
      %c0_14 = arith.constant 0 : index
      %22 = vector.load %arg16[%c0_13, %c0_14] : memref<8x128xf32, #tpu.memory_space<vmem>>, vector<8x128xf32>
      tpu.vector_store %arg16[%c0_13, %c0_14], %21 {strides = array<i32>} : memref<8x128xf32, #tpu.memory_space<vmem>>, vector<8x128xf32>,
      %c0_15 = arith.constant 0 : index
      %c0_16 = arith.constant 0 : index
      %23 = vector.load %arg19[%c0_15, %c0_16] : memref<8x128xf32, #tpu.memory_space<vmem>>, vector<8x128xf32>
      %c0_17 = arith.constant 0 : index
      %c0_18 = arith.constant 0 : index
      %24 = vector.load %arg15[%c0_17, %c0_18] : memref<1x128xf32, #tpu.memory_space<vmem>>, vector<1x128xf32>
      %25 = vector.broadcast %24 : vector<1x128xf32> to vector<8x128xf32>
      %26 = arith.addf %23, %25 : vector<8x128xf32>
      %cst_19 = arith.constant 0.000000e+00 : f32
      %27 = vector.broadcast %cst_19 : f32 to vector<8x128xf32>
      %28 = arith.maximumf %26, %27 : vector<8x128xf32>
      %c0_20 = arith.constant 0 : index
      %c0_21 = arith.constant 0 : index
      %29 = vector.load %arg17[%c0_20, %c0_21] : memref<8x128xf32, #tpu.memory_space<vmem>>, vector<8x128xf32>
      tpu.vector_store %arg17[%c0_20, %c0_21], %28 {strides = array<i32>} : memref<8x128xf32, #tpu.memory_space<vmem>>, vector<8x128xf32>,
    } else {
    }
    return
  }
  func.func @transform_0(%arg0: i32, %arg1: i32) -> (i32, i32) {
    %c0_i32 = arith.constant 0 : i32
    %c0_i32_0 = arith.constant 0 : i32
    return %arg0, %c0_i32 : i32, i32
  }
  func.func @transform_1(%arg0: i32, %arg1: i32) -> (i32, i32) {
    %c0_i32 = arith.constant 0 : i32
    %c0_i32_0 = arith.constant 0 : i32
    return %arg0, %c0_i32 : i32, i32
  }
  func.func @transform_2(%arg0: i32, %arg1: i32) -> (i32, i32) {
    %c0_i32 = arith.constant 0 : i32
    %c0_i32_0 = arith.constant 0 : i32
    return %c0_i32, %arg1 : i32, i32
  }
  func.func @transform_3(%arg0: i32, %arg1: i32) -> (i32, i32) {
    %c0_i32 = arith.constant 0 : i32
    %c0_i32_0 = arith.constant 0 : i32
    %c0_i32_1 = arith.constant 0 : i32
    return %c0_i32, %c0_i32_0 : i32, i32
  }
  func.func @transform_4(%arg0: i32, %arg1: i32) -> (i32, i32, i32) {
    %c0_i32 = arith.constant 0 : i32
    %c0_i32_0 = arith.constant 0 : i32
    %c0_i32_1 = arith.constant 0 : i32
    return %arg1, %c0_i32, %c0_i32_0 : i32, i32, i32
  }
  func.func @transform_5(%arg0: i32, %arg1: i32) -> (i32, i32) {
    %c0_i32 = arith.constant 0 : i32
    %c0_i32_0 = arith.constant 0 : i32
    %c0_i32_1 = arith.constant 0 : i32
    return %c0_i32, %c0_i32_0 : i32, i32
  }
  func.func @transform_6(%arg0: i32, %arg1: i32) -> (i32, i32) {
    %c0_i32 = arith.constant 0 : i32
    %c0_i32_0 = arith.constant 0 : i32
    return %arg1, %c0_i32 : i32, i32
  }
  func.func @transform_7(%arg0: i32, %arg1: i32) -> (i32, i32) {
    %c0_i32 = arith.constant 0 : i32
    %c0_i32_0 = arith.constant 0 : i32
    %c0_i32_1 = arith.constant 0 : i32
    return %c0_i32, %c0_i32_0 : i32, i32
  }
  func.func @transform_8(%arg0: i32, %arg1: i32) -> (i32, i32) {
    %c0_i32 = arith.constant 0 : i32
    %c0_i32_0 = arith.constant 0 : i32
    return %c0_i32, %arg1 : i32, i32
  }
  func.func @transform_9(%arg0: i32, %arg1: i32) -> (i32, i32) {
    %c0_i32 = arith.constant 0 : i32
    %c0_i32_0 = arith.constant 0 : i32
    %c0_i32_1 = arith.constant 0 : i32
    return %c0_i32, %c0_i32_0 : i32, i32
  }
  func.func @transform_10(%arg0: i32, %arg1: i32) -> (i32, i32, i32) {
    %c0_i32 = arith.constant 0 : i32
    %c0_i32_0 = arith.constant 0 : i32
    %c0_i32_1 = arith.constant 0 : i32
    return %arg1, %c0_i32, %c0_i32_0 : i32, i32, i32
  }
  func.func @transform_11(%arg0: i32, %arg1: i32) -> (i32, i32) {
    %c0_i32 = arith.constant 0 : i32
    %c0_i32_0 = arith.constant 0 : i32
    %c0_i32_1 = arith.constant 0 : i32
    return %c0_i32, %c0_i32_0 : i32, i32
  }
  func.func @transform_12(%arg0: i32, %arg1: i32) -> (i32, i32) {
    %c0_i32 = arith.constant 0 : i32
    %c0_i32_0 = arith.constant 0 : i32
    return %arg1, %c0_i32 : i32, i32
  }
  func.func @transform_13(%arg0: i32, %arg1: i32) -> (i32, i32) {
    %c0_i32 = arith.constant 0 : i32
    %c0_i32_0 = arith.constant 0 : i32
    %c0_i32_1 = arith.constant 0 : i32
    return %c0_i32, %c0_i32_0 : i32, i32
  }
  func.func @transform_14(%arg0: i32, %arg1: i32) -> (i32, i32) {
    %c0_i32 = arith.constant 0 : i32
    %c0_i32_0 = arith.constant 0 : i32
    return %arg0, %c0_i32 : i32, i32
  }
  func.func @transform_15(%arg0: i32, %arg1: i32) -> (i32, i32) {
    %c0_i32 = arith.constant 0 : i32
    %c0_i32_0 = arith.constant 0 : i32
    return %arg0, %c0_i32 : i32, i32
  }
}

</mosaic_0001>

<bundles_post_ra>
// kernel: attn_modality_gated.1
= control target key start
LH: loop header
LB: loop body
LE: loop exit
PB: predicated region body
PF: predicated region fallthrough
CT: control target
= control target key end

     0   :  { %21 = vsyncpa [#allocation5], 0  ;;  %s2137_s0 = inlined_call_operand.vmem [shape: bf16[8,128], index: 0, kind: input, shape index: {}]   ;;  %s2138_s1 = inlined_call_operand.vmem [shape: bf16[8,128], index: 1, kind: input, shape index: {}]   ;;  %s2139_s2 = inlined_call_operand.hbm [shape: bf16[128,128], index: 2, kind: input, shape index: {}]   ;;  %s2140_s3 = inlined_call_operand.hbm [shape: f32[1,128], index: 3, kind: input, shape index: {}]   ;;  %s2141_s4 = inlined_call_operand.hbm [shape: bf16[128,128,128], index: 4, kind: input, shape index: {}]   ;;  %s2142_s5 = inlined_call_operand.hbm [shape: f32[1,128], index: 5, kind: input, shape index: {}]   ;;  %s2143_s6 = inlined_call_operand.hbm [shape: bf16[128,128], index: 6, kind: input, shape index: {}]   ;;  %s2144_s7 = inlined_call_operand.hbm [shape: f32[1,128], index: 7, kind: input, shape index: {}]   ;;  %s2145_s8 = inlined_call_operand.hbm [shape: bf16[128,128], index: 8, kind: input, shape index: {}]   ;;  %s2146_s9 = inlined_call_operand.hbm [shape: f32[1,128], index: 9, kind: input, shape index: {}]   ;;  %s2147_s10 = inlined_call_operand.hbm [shape: bf16[128,128,128], index: 10, kind: input, shape index: {}]   ;;  %s2148_s11 = inlined_call_operand.hbm [shape: f32[1,128], index: 11, kind: input, shape index: {}]   ;;  %s2149_s12 = inlined_call_operand.hbm [shape: bf16[128,128], index: 12, kind: input, shape index: {}]   ;;  %s2150_s13 = inlined_call_operand.hbm [shape: f32[1,128], index: 13, kind: input, shape index: {}]   ;;  %s2151_s14 = inlined_call_operand.hbm [shape: f32[8,128], index: 14, kind: output, shape index: {0}]   ;;  %s2152_s15 = inlined_call_operand.hbm [shape: f32[8,128], index: 15, kind: output, shape index: {1}]  }
   0x1   :  { %22 = vsyncpa [#allocation8], 0 }
   0x2   :  { %23 = vsyncpa [#allocation11], 0 }
   0x3   :  { %24 = vsyncpa [#allocation14], 0 }
   0x4   :  { %25 = vsyncpa [#allocation17], 0 }
   0x5   :  { %26 = vsyncpa [#allocation20], 0 }
   0x6   :  { %27 = vsyncpa [#allocation23], 0 }
   0x7   :  { %28 = vsyncpa [#allocation6], 0 }
   0x8   :  { %29 = vsyncpa [#allocation26], 0  ;;  %s1732_s18 = smov [#allocation7]   ;;  %s1733_s20 = smov [#allocation10]  }
   0x9   :  { %s52_s19 = sshll.u32 %s1732_s18, 4  ;;  %s74_s21 = sshll.u32 %s1733_s20, 4  ;;  %s53_s19 = int_to_ptr.vmem [resolvable:$true] %s52_s19  ;;  %s75_s21 = int_to_ptr.vmem [resolvable:$true] %s74_s21 }
   0xa   :  { %s1374_s24 = scalar_lea.hbm %s2140_s3, 16 }
   0xb   :  { %p1375_p0 = scmp.ne.s32.totalorder %s2140_s3, %s1374_s24  ;;  %p1378_p1 = scmp.lt.u32.totalorder %s1374_s24, %s2140_s3 }
   0xd   :  { %p1380_p2 = pnand %p1378_p1, %p1375_p0 }
   0xf   :  { %1383 = shalt.err (!%p1380_p2)
}
  0x10   :  { %s1384_s29 = scalar_lea.vmem %s53_s19, 16  ;;  %s1388_s30 = scalar_lea.vmem %s53_s19, 32 }
  0x11   :  { %p1385_p3 = scmp.ne.s32.totalorder %s53_s19, %s1384_s29  ;;  %p1389_p4 = scmp.lt.s32.totalorder %s53_s19, %s53_s19 }
  0x12   :  { %p1390_p5 = scmp.lt.s32.totalorder %s1388_s30, %s1384_s29 }
  0x14   :  { %p1391_p6 = por %p1390_p5, %p1389_p4 }
  0x16   :  { %p1392_p7 = pnand %p1391_p6, %p1385_p3 }
  0x18   :  { %1395 = shalt.err (!%p1392_p7)
}
  0x19   :  { %55 = dma.hbm_to_vmem [thread:$0]  %s2140_s3, 16, %s53_s19, [#allocation8]  }
  0x1a   :  { %s1396_s22 = scalar_lea.hbm %s2142_s5, 16 }
  0x1b   :  { %p1397_p8 = scmp.ne.s32.totalorder %s2142_s5, %s1396_s22  ;;  %p1400_p9 = scmp.lt.u32.totalorder %s1396_s22, %s2142_s5 }
  0x1d   :  { %p1402_p10 = pnand %p1400_p9, %p1397_p8 }
  0x1f   :  { %1405 = shalt.err (!%p1402_p10)
}
  0x20   :  { %s1406_s27 = scalar_lea.vmem %s75_s21, 16  ;;  %s1410_s28 = scalar_lea.vmem %s75_s21, 32 }
  0x21   :  { %p1407_p11 = scmp.ne.s32.totalorder %s75_s21, %s1406_s27  ;;  %p1411_p12 = scmp.lt.s32.totalorder %s75_s21, %s75_s21 }
  0x22   :  { %p1412_p13 = scmp.lt.s32.totalorder %s1410_s28, %s1406_s27 }
  0x24   :  { %p1413_p0 = por %p1412_p13, %p1411_p12 }
  0x26   :  { %p1414_p1 = pnand %p1413_p0, %p1407_p11 }
  0x28   :  { %1417 = shalt.err (!%p1414_p1)
}
  0x29   :  { %77 = dma.hbm_to_vmem [thread:$0]  %s2142_s5, 16, %s75_s21, [#allocation11]  }
  0x2a   :  { %s1734_s29 = smov [#allocation13]   ;;  %s1735_s16 = smov [#allocation16]  }
  0x2b   :  { %s96_s30 = sshll.u32 %s1734_s29, 4  ;;  %s118_s17 = sshll.u32 %s1735_s16, 4  ;;  %s97_s30 = int_to_ptr.vmem [resolvable:$true] %s96_s30  ;;  %s119_s17 = int_to_ptr.vmem [resolvable:$true] %s118_s17 }
  0x2c   :  { %s1418_s22 = scalar_lea.hbm %s2144_s7, 16 }
  0x2d   :  { %p1419_p2 = scmp.ne.s32.totalorder %s2144_s7, %s1418_s22  ;;  %p1422_p3 = scmp.lt.u32.totalorder %s1418_s22, %s2144_s7 }
  0x2f   :  { %p1424_p4 = pnand %p1422_p3, %p1419_p2 }
  0x31   :  { %1427 = shalt.err (!%p1424_p4)
}
  0x32   :  { %s1428_s5 = scalar_lea.vmem %s97_s30, 16  ;;  %s1432_s21 = scalar_lea.vmem %s97_s30, 32 }
  0x33   :  { %p1429_p5 = scmp.ne.s32.totalorder %s97_s30, %s1428_s5  ;;  %p1433_p6 = scmp.lt.s32.totalorder %s97_s30, %s97_s30 }
  0x34   :  { %p1434_p7 = scmp.lt.s32.totalorder %s1432_s21, %s1428_s5 }
  0x36   :  { %p1435_p8 = por %p1434_p7, %p1433_p6 }
  0x38   :  { %p1436_p9 = pnand %p1435_p8, %p1429_p5 }
  0x3a   :  { %1439 = shalt.err (!%p1436_p9)
}
  0x3b   :  { %99 = dma.hbm_to_vmem [thread:$0]  %s2144_s7, 16, %s97_s30, [#allocation14]  }
  0x3c   :  { %s1440_s29 = scalar_lea.hbm %s2146_s9, 16 }
  0x3d   :  { %p1441_p10 = scmp.ne.s32.totalorder %s2146_s9, %s1440_s29  ;;  %p1444_p11 = scmp.lt.u32.totalorder %s1440_s29, %s2146_s9 }
  0x3f   :  { %p1446_p12 = pnand %p1444_p11, %p1441_p10 }
  0x41   :  { %1449 = shalt.err (!%p1446_p12)
}
  0x42   :  { %s1450_s23 = scalar_lea.vmem %s119_s17, 16  ;;  %s1454_s24 = scalar_lea.vmem %s119_s17, 32 }
  0x43   :  { %p1451_p13 = scmp.ne.s32.totalorder %s119_s17, %s1450_s23  ;;  %p1455_p0 = scmp.lt.s32.totalorder %s119_s17, %s119_s17 }
  0x44   :  { %p1456_p1 = scmp.lt.s32.totalorder %s1454_s24, %s1450_s23 }
  0x46   :  { %p1457_p2 = por %p1456_p1, %p1455_p0 }
  0x48   :  { %p1458_p3 = pnand %p1457_p2, %p1451_p13 }
  0x4a   :  { %1461 = shalt.err (!%p1458_p3)
}
  0x4b   :  { %121 = dma.hbm_to_vmem [thread:$0]  %s2146_s9, 16, %s119_s17, [#allocation17]  }
  0x4c   :  { %s1736_s25 = smov [#allocation19]   ;;  %s1737_s5 = smov [#allocation4]  }
  0x4d   :  { %s140_s26 = sshll.u32 %s1736_s25, 4  ;;  %s39_s21 = sshll.u32 %s1737_s5, 4  ;;  %s141_s26 = int_to_ptr.vmem [resolvable:$true] %s140_s26  ;;  %s1882_s21 = int_to_ptr.vmem [resolvable:$true] %s39_s21 }
  0x4e   :  { %s1462_s3 = scalar_lea.hbm %s2148_s11, 16 }
  0x4f   :  { %p1463_p4 = scmp.ne.s32.totalorder %s2148_s11, %s1462_s3  ;;  %p1466_p5 = scmp.lt.u32.totalorder %s1462_s3, %s2148_s11 }
  0x51   :  { %p1468_p6 = pnand %p1466_p5, %p1463_p4 }
  0x53   :  { %1471 = shalt.err (!%p1468_p6)
}
  0x54   :  { %s1472_s9 = scalar_lea.vmem %s141_s26, 16  ;;  %s1476_s17 = scalar_lea.vmem %s141_s26, 32 }
  0x55   :  { %p1473_p7 = scmp.ne.s32.totalorder %s141_s26, %s1472_s9  ;;  %p1477_p8 = scmp.lt.s32.totalorder %s141_s26, %s141_s26 }
  0x56   :  { %p1478_p9 = scmp.lt.s32.totalorder %s1476_s17, %s1472_s9 }
  0x58   :  { %p1479_p10 = por %p1478_p9, %p1477_p8 }
  0x5a   :  { %p1480_p11 = pnand %p1479_p10, %p1473_p7 }
  0x5c   :  { %1483 = shalt.err (!%p1480_p11)
}
  0x5d   :  { %143 = dma.hbm_to_vmem [thread:$0]  %s2148_s11, 16, %s141_s26, [#allocation20]  }
  0x5e   :  { %s1484_s7 = scalar_lea.hbm %s2139_s2, 1024 }
  0x5f   :  { %p1485_p12 = scmp.ne.s32.totalorder %s2139_s2, %s1484_s7  ;;  %p1488_p13 = scmp.lt.u32.totalorder %s1484_s7, %s2139_s2 }
  0x61   :  { %p1490_p0 = pnand %p1488_p13, %p1485_p12 }
  0x63   :  { %1493 = shalt.err (!%p1490_p0)
}
  0x64   :  { %s1494_s28 = scalar_lea.vmem %s1882_s21, 1024  ;;  %p1499_p2 = scmp.lt.s32.totalorder %s1882_s21, %s1882_s21 }
  0x65   :  { %p1495_p1 = scmp.ne.s32.totalorder %s1882_s21, %s1494_s28  ;;  %p1500_p3 = scmp.lt.s32.totalorder %s1494_s28, %s1494_s28 }
  0x67   :  { %p1501_p4 = por %p1500_p3, %p1499_p2 }
  0x69   :  { %p1502_p5 = pnand %p1501_p4, %p1495_p1 }
  0x6b   :  { %1505 = shalt.err (!%p1502_p5)
}
  0x6c   :  { %s1738_s11 = smov 64   ;;  %s1739_s26 = smov 4  }
  0x6d   :  { %45 = dma.hbm_to_vmem [thread:$0]  %s2139_s2, 1024, %s1882_s21, [#allocation5], %s1738_s11, %s1738_s11, %s1739_s26  }
  0x6e   :  { %s1740_s29 = smov [#allocation9]   ;;  %s1741_s18 = smov [#allocation12]  }
  0x6f   :  { %s61_s16 = sshll.u32 %s1740_s29, 4  ;;  %s83_s9 = sshll.u32 %s1741_s18, 4  ;;  %s62_s16 = int_to_ptr.vmem [resolvable:$true] %s61_s16  ;;  %s1916_s9 = int_to_ptr.vmem [resolvable:$true] %s83_s9 }
  0x70   :  { %s1506_s22 = scalar_lea.hbm %s2141_s4, 131072 }
  0x71   :  { %p1507_p6 = scmp.ne.s32.totalorder %s2141_s4, %s1506_s22  ;;  %p1510_p7 = scmp.lt.u32.totalorder %s1506_s22, %s2141_s4 }
  0x73   :  { %p1512_p8 = pnand %p1510_p7, %p1507_p6 }
  0x75   :  { %1515 = shalt.err (!%p1512_p8)
}
  0x76   :  { %s1516_s2 = scalar_lea.vmem %s62_s16, 131072  ;;  %p1521_p10 = scmp.lt.s32.totalorder %s62_s16, %s62_s16 }
  0x77   :  { %p1517_p9 = scmp.ne.s32.totalorder %s62_s16, %s1516_s2  ;;  %p1522_p11 = scmp.lt.s32.totalorder %s1516_s2, %s1516_s2 }
  0x79   :  { %p1523_p12 = por %p1522_p11, %p1521_p10 }
  0x7b   :  { %p1524_p13 = pnand %p1523_p12, %p1517_p9 }
  0x7d   :  { %1527 = shalt.err (!%p1524_p13)
}
  0x7e   :  { %67 = dma.hbm_to_vmem [thread:$0]  %s2141_s4, 131072, %s62_s16, [#allocation8], %s1738_s11, %s1738_s11, %s1739_s26  }
  0x7f   :  { %s1528_s28 = scalar_lea.hbm %s2143_s6, 1024 }
  0x80   :  { %p1529_p0 = scmp.ne.s32.totalorder %s2143_s6, %s1528_s28  ;;  %p1532_p1 = scmp.lt.u32.totalorder %s1528_s28, %s2143_s6 }
  0x82   :  { %p1534_p2 = pnand %p1532_p1, %p1529_p0 }
  0x84   :  { %1537 = shalt.err (!%p1534_p2)
}
  0x85   :  { %s1538_s17 = scalar_lea.vmem %s1916_s9, 1024  ;;  %p1543_p4 = scmp.lt.s32.totalorder %s1916_s9, %s1916_s9 }
  0x86   :  { %p1539_p3 = scmp.ne.s32.totalorder %s1916_s9, %s1538_s17  ;;  %p1544_p5 = scmp.lt.s32.totalorder %s1538_s17, %s1538_s17 }
  0x88   :  { %p1545_p6 = por %p1544_p5, %p1543_p4 }
  0x8a   :  { %p1546_p7 = pnand %p1545_p6, %p1539_p3 }
  0x8c   :  { %1549 = shalt.err (!%p1546_p7)
}
  0x8d   :  { %89 = dma.hbm_to_vmem [thread:$0]  %s2143_s6, 1024, %s1916_s9, [#allocation11], %s1738_s11, %s1738_s11, %s1739_s26  }
  0x8e   :  { %s1742_s20 = smov [#allocation15]   ;;  %s1743_s23 = smov [#allocation18]  }
  0x8f   :  { %s105_s22 = sshll.u32 %s1742_s20, 4  ;;  %s127_s24 = sshll.u32 %s1743_s23, 4  ;;  %s106_s22 = int_to_ptr.vmem [resolvable:$true] %s105_s22  ;;  %s1953_s24 = int_to_ptr.vmem [resolvable:$true] %s127_s24 }
  0x90   :  { %s1550_s2 = scalar_lea.hbm %s2145_s8, 1024 }
  0x91   :  { %p1551_p8 = scmp.ne.s32.totalorder %s2145_s8, %s1550_s2  ;;  %p1554_p9 = scmp.lt.u32.totalorder %s1550_s2, %s2145_s8 }
  0x93   :  { %p1556_p10 = pnand %p1554_p9, %p1551_p8 }
  0x95   :  { %1559 = shalt.err (!%p1556_p10)
}
  0x96   :  { %s1560_s6 = scalar_lea.vmem %s106_s22, 1024  ;;  %p1565_p12 = scmp.lt.s32.totalorder %s106_s22, %s106_s22 }
  0x97   :  { %p1561_p11 = scmp.ne.s32.totalorder %s106_s22, %s1560_s6  ;;  %p1566_p13 = scmp.lt.s32.totalorder %s1560_s6, %s1560_s6 }
  0x99   :  { %p1567_p0 = por %p1566_p13, %p1565_p12 }
  0x9b   :  { %p1568_p1 = pnand %p1567_p0, %p1561_p11 }
  0x9d   :  { %1571 = shalt.err (!%p1568_p1)
}
  0x9e   :  { %111 = dma.hbm_to_vmem [thread:$0]  %s2145_s8, 1024, %s106_s22, [#allocation14], %s1738_s11, %s1738_s11, %s1739_s26  }
  0x9f   :  { %s1572_s29 = scalar_lea.hbm %s2147_s10, 131072 }
  0xa0   :  { %p1573_p2 = scmp.ne.s32.totalorder %s2147_s10, %s1572_s29  ;;  %p1576_p3 = scmp.lt.u32.totalorder %s1572_s29, %s2147_s10 }
  0xa2   :  { %p1578_p4 = pnand %p1576_p3, %p1573_p2 }
  0xa4   :  { %1581 = shalt.err (!%p1578_p4)
}
  0xa5   :  { %s1582_s20 = scalar_lea.vmem %s1953_s24, 131072  ;;  %p1587_p6 = scmp.lt.s32.totalorder %s1953_s24, %s1953_s24 }
  0xa6   :  { %p1583_p5 = scmp.ne.s32.totalorder %s1953_s24, %s1582_s20  ;;  %p1588_p7 = scmp.lt.s32.totalorder %s1582_s20, %s1582_s20 }
  0xa8   :  { %p1589_p8 = por %p1588_p7, %p1587_p6 }
  0xaa   :  { %p1590_p9 = pnand %p1589_p8, %p1583_p5 }
  0xac   :  { %1593 = shalt.err (!%p1590_p9)
}
  0xad   :  { %133 = dma.hbm_to_vmem [thread:$0]  %s2147_s10, 131072, %s1953_s24, [#allocation17], %s1738_s11, %s1738_s11, %s1739_s26  }
  0xae   :  { %s1744_s23 = smov [#allocation21]   ;;  %s1745_s30 = smov [#allocation22]  }
  0xaf   :  { %s149_s7 = sshll.u32 %s1744_s23, 4  ;;  %s162_s2 = sshll.u32 %s1745_s30, 4  ;;  %s150_s7 = int_to_ptr.vmem [resolvable:$true] %s149_s7  ;;  %s163_s2 = int_to_ptr.vmem [resolvable:$true] %s162_s2 }
  0xb0   :  { %s1594_s5 = scalar_lea.hbm %s2149_s12, 1024 }
  0xb1   :  { %p1595_p10 = scmp.ne.s32.totalorder %s2149_s12, %s1594_s5  ;;  %p1598_p11 = scmp.lt.u32.totalorder %s1594_s5, %s2149_s12 }
  0xb3   :  { %p1600_p12 = pnand %p1598_p11, %p1595_p10 }
  0xb5   :  { %1603 = shalt.err (!%p1600_p12)
}
  0xb6   :  { %s1604_s10 = scalar_lea.vmem %s150_s7, 1024  ;;  %p1609_p0 = scmp.lt.s32.totalorder %s150_s7, %s150_s7 }
  0xb7   :  { %p1605_p13 = scmp.ne.s32.totalorder %s150_s7, %s1604_s10  ;;  %p1610_p1 = scmp.lt.s32.totalorder %s1604_s10, %s1604_s10 }
  0xb9   :  { %p1611_p2 = por %p1610_p1, %p1609_p0 }
  0xbb   :  { %p1612_p3 = pnand %p1611_p2, %p1605_p13 }
  0xbd   :  { %1615 = shalt.err (!%p1612_p3)
}
  0xbe   :  { %155 = dma.hbm_to_vmem [thread:$0]  %s2149_s12, 1024, %s150_s7, [#allocation20], %s1738_s11, %s1738_s11, %s1739_s26  }
  0xbf   :  { %s1616_s18 = scalar_lea.hbm %s2150_s13, 16 }
  0xc0   :  { %p1617_p4 = scmp.ne.s32.totalorder %s2150_s13, %s1616_s18  ;;  %p1620_p5 = scmp.lt.u32.totalorder %s1616_s18, %s2150_s13 }
  0xc2   :  { %p1622_p6 = pnand %p1620_p5, %p1617_p4 }
  0xc4   :  { %1625 = shalt.err (!%p1622_p6)
}
  0xc5   :  { %s1626_s8 = scalar_lea.vmem %s163_s2, 16  ;;  %s1630_s22 = scalar_lea.vmem %s163_s2, 32 }
  0xc6   :  { %p1627_p7 = scmp.ne.s32.totalorder %s163_s2, %s1626_s8  ;;  %p1631_p8 = scmp.lt.s32.totalorder %s163_s2, %s163_s2 }
  0xc7   :  { %p1632_p9 = scmp.lt.s32.totalorder %s1630_s22, %s1626_s8 }
  0xc9   :  { %p1633_p10 = por %p1632_p9, %p1631_p8 }
  0xcb   :  { %p1634_p11 = pnand %p1633_p10, %p1627_p7 }
  0xcd   :  { %1637 = shalt.err (!%p1634_p11)
}
  0xce   :  { %165 = dma.hbm_to_vmem [thread:$0]  %s2150_s13, 16, %s163_s2, [#allocation23]  }
  0xcf   :  { %1698 = dma.done.wait [#allocation5], 1024  }
  0xd0   :  { %1699 = vsyncadd [#allocation5], 4294966272 }
  0xd1   :  { %1700 = dma.done.wait [#allocation8], 131088  }
  0xd2   :  { %1701 = vsyncadd [#allocation8], 4294836208 }
  0xd3   :  { %1702 = dma.done.wait [#allocation11], 1040  }
  0xd4   :  { %1703 = vsyncadd [#allocation11], 4294966256 }
  0xd5   :  { %1704 = dma.done.wait [#allocation14], 1040  }
  0xd6   :  { %1705 = vsyncadd [#allocation14], 4294966256 }
  0xd7   :  { %1706 = dma.done.wait [#allocation17], 131088  }
  0xd8   :  { %1707 = vsyncadd [#allocation17], 4294836208 }
  0xd9   :  { %1708 = dma.done.wait [#allocation20], 1040  }
  0xda   :  { %1709 = vsyncadd [#allocation20], 4294966256 }
  0xdb   :  { %1710 = dma.done.wait [#allocation23], 16  }
  0xdc   :  { %1711 = vsyncadd [#allocation23], 4294967280  ;;  %v1746_v0 = vmov 0.0   ;;  %vm1747_vm0 = vmmov 0   ;;  %v2025_v1 = vld [vmem:[%s2138_s1] sm:$0xf]  ;;  %v333_v13 = vlaneseq }
  0xdd   :  { %207 = vst [vmem:[#allocation2] sm:$0xff] %v1746_v0  ;;  %208 = vst [vmem:[#allocation3] sm:$0xff] %v1746_v0  ;;  %1144 = vmatprep.subr.bf16.mxu0 %v1746_v0  ;;  %1160 = vmatprep.mubr.msk.bf16.mxu0 %vm1747_vm0, %v1746_v0  ;;  %v212_v2 = vunpack.c.l.bf16 %v2025_v1  ;;  %v1318_v3 = vld [vmem:[#allocation4] sm:$0xff]   ;;  %v1319_v4 = vld [vmem:[#allocation4 + $0x8] sm:$0xff]   ;;  %v1716_v22 = vmov 0.0  }
  0xde   :  { %1145 = vmatpush3.bf16.msra.mxu0 %v1318_v3  ;;  %v1320_v5 = vld [vmem:[#allocation4 + $0x10] sm:$0xff]   ;;  %v2033_v6 = vld [vmem:[%s2137_s0] sm:$0xf]  ;;  %v1322_v9 = vld [vmem:[#allocation4 + $0x20] sm:$0xff]   ;;  %v2042_v14 = vand.u32 127, %v333_v13  ;;  %s2047_s0 = smov 0  }
  0xdf   :  { %1146 = vmatprep.subr.bf16.mxu0 %v1746_v0  ;;  %v211_v7 = vunpack.c.l.bf16 %v2033_v6  ;;  %v1321_v8 = vld [vmem:[#allocation4 + $0x18] sm:$0xff]   ;;  %v1323_v10 = vld [vmem:[#allocation4 + $0x28] sm:$0xff]   ;;  %v1324_v11 = vld [vmem:[#allocation4 + $0x30] sm:$0xff]  }
  0xe0   :  { %v1325_v12 = vld [vmem:[#allocation4 + $0x38] sm:$0xff]   ;;  %v1026_v15 = vld [vmem:[#allocation7] ss:$0 sm:$0xff] }
  0xe2   :  { %1147 = vmatpush3.bf16.msra.mxu0 %v1319_v4 }
  0xe3   :  { %1148 = vmatprep.subr.bf16.mxu0 %v1746_v0 }
  0xe6   :  { %1149 = vmatpush3.bf16.msra.mxu0 %v1320_v5 }
  0xe7   :  { %1150 = vmatprep.subr.bf16.mxu0 %v1746_v0 }
  0xea   :  { %1151 = vmatpush3.bf16.msra.mxu0 %v1321_v8 }
  0xeb   :  { %1152 = vmatprep.subr.bf16.mxu0 %v1746_v0 }
  0xee   :  { %1153 = vmatpush3.bf16.msra.mxu0 %v1322_v9 }
  0xef   :  { %1154 = vmatprep.subr.bf16.mxu0 %v1746_v0 }
  0xf2   :  { %1155 = vmatpush3.bf16.msra.mxu0 %v1323_v10 }
  0xf3   :  { %1156 = vmatprep.subr.bf16.mxu0 %v1746_v0 }
  0xf6   :  { %1157 = vmatpush3.bf16.msra.mxu0 %v1324_v11 }
  0xf7   :  { %1158 = vmatprep.subr.bf16.mxu0 %v1746_v0 }
  0xfa   :  { %1159 = vmatpush3.bf16.msra.mxu0 %v1325_v12 }
  0xfd   :  { %1161 = vmatmul.mubr.bf16.vlgmr.msra.gmra.mrb[0].mxu0 %v2033_v6 }
 0x1d0   :  { %v326_v16 = vpop.f32.mrb[0].mxu0 }
 0x1d1   :  { %v2044_v17 = vadd.f32 %v1026_v15, %v326_v16  ;;  %v1162_v18 = vpop.f32.mrb[1].mxu0 }
 0x1d2   :  { %v329_v19 = vpop.f32.mrb[2].mxu0 }
 0x1d3   :  { %v332_v20 = vmax.f32 %v2044_v17, 0.0  ;;  %v1163_v21 = vpop.f32.mrb[3].mxu0 }
 0x1d4 LB: > { %v1748_v23 = vmov 0.0   ;;  %vm1749_vm1 = vmmov 0   ;;  %s1088_s1 = sshll.u32 %s1722_s0, 6  ;;  %v452_v37 = vstv %s1722_s0  ;;  %s340_s0 = sadd.s32 1, %s1722_s0   ;;  %s1722_s0 = sphi %s2047_s0, %s340_s0   ;;  %v1718_v22 = vphi %v1716_v22, %v1717_v22  }
 0x1d5   : > { %1164 = vmatprep.subr.bf16.mxu0 %v1748_v23  ;;  %1180 = vmatprep.mubr.msk.bf16.mxu0 %vm1749_vm1, %v1748_v23  ;;  %s344_s30 = scalar_lea.vmem [#allocation9], %s1088_s1  ;;  %vm453_vm2 = vcmp.eq.s32.totalorder %v2042_v14, %v452_v37  ;;  %p337_p12 = scmp.ge.s32.totalorder %s340_s0, 128  }
 0x1d6   : > { %v1326_v24 = vld [vmem:[%s344_s30] sm:$0xff]   ;;  %v1327_v25 = vld [vmem:[%s344_s30 + $0x8] sm:$0xff]   ;;  %v1328_v26 = vld [vmem:[%s344_s30 + $0x10] sm:$0xff]   ;;  %v1045_v38 = vsel %vm453_vm2, 1.0, %v1748_v23  ;;  %1204 = vmatprep.subr.bf16.mxu1 (%p337_p12), %v1746_v0  ;;  %1220 = vmatprep.mubr.msk.bf16.mxu1 (%p337_p12), %vm1747_vm0, %v1746_v0  ;;  %v1724_v17 = vmov (%p337_p12), 0.0   ;;  %s2087_s2 = smov (%p337_p12), 0  }
 0x1d7   : > { %1165 = vmatpush3.bf16.msra.mxu0 %v1326_v24  ;;  %v1329_v27 = vld [vmem:[%s344_s30 + $0x18] sm:$0xff]   ;;  %v1330_v28 = vld [vmem:[%s344_s30 + $0x20] sm:$0xff]   ;;  %v1331_v29 = vld [vmem:[%s344_s30 + $0x28] sm:$0xff]  }
 0x1d8   : > { %1166 = vmatprep.subr.bf16.mxu0 %v1748_v23  ;;  %v1332_v30 = vld [vmem:[%s344_s30 + $0x30] sm:$0xff]   ;;  %v1333_v31 = vld [vmem:[%s344_s30 + $0x38] sm:$0xff]   ;;  %v1340_v48 = vld [vmem:[#allocation12 + $0x18] sm:$0xff] (%p337_p12)  }
 0x1d9   :  { %v1334_v42 = vld [vmem:[#allocation12] sm:$0xff] (%p337_p12)   ;;  %v1336_v44 = vld [vmem:[#allocation12 + $0x8] sm:$0xff] (%p337_p12)   ;;  %v1338_v46 = vld [vmem:[#allocation12 + $0x10] sm:$0xff] (%p337_p12)  }
 0x1da   :  { %v1335_v43 = vld [vmem:[#allocation15] sm:$0xff] (%p337_p12)   ;;  %v1337_v45 = vld [vmem:[#allocation15 + $0x8] sm:$0xff] (%p337_p12)   ;;  %v1339_v47 = vld [vmem:[#allocation15 + $0x10] sm:$0xff] (%p337_p12)  }
 0x1db   : > { %1167 = vmatpush3.bf16.msra.mxu0 %v1327_v25  ;;  %1205 = vmatpush3.bf16.msra.mxu1 (%p337_p12), %v1335_v43  ;;  %v1341_v49 = vld [vmem:[#allocation15 + $0x18] sm:$0xff] (%p337_p12)   ;;  %v1343_v51 = vld [vmem:[#allocation15 + $0x20] sm:$0xff] (%p337_p12)   ;;  %v1345_v55 = vld [vmem:[#allocation15 + $0x28] sm:$0xff] (%p337_p12)  }
 0x1dc   : > { %1168 = vmatprep.subr.bf16.mxu0 %v1748_v23  ;;  %1206 = vmatprep.subr.bf16.mxu1 (%p337_p12), %v1746_v0  ;;  %v1342_v50 = vld [vmem:[#allocation12 + $0x20] sm:$0xff] (%p337_p12)   ;;  %v1046_v52 = vld [vmem:[#allocation10] ss:$0 sm:$0xff] (%p337_p12)  ;;  %v1344_v54 = vld [vmem:[#allocation12 + $0x28] sm:$0xff] (%p337_p12)  }
 0x1dd   :  { %v1346_v57 = vld [vmem:[#allocation12 + $0x30] sm:$0xff] (%p337_p12)   ;;  %v1348_v59 = vld [vmem:[#allocation12 + $0x38] sm:$0xff] (%p337_p12)   ;;  %v1056_v4 = vld [vmem:[#allocation16] ss:$0 sm:$0xff] (%p337_p12) }
 0x1de   :  { %v1347_v58 = vld [vmem:[#allocation15 + $0x30] sm:$0xff] (%p337_p12)   ;;  %v1349_v60 = vld [vmem:[#allocation15 + $0x38] sm:$0xff] (%p337_p12)  }
 0x1df   : > { %1169 = vmatpush3.bf16.msra.mxu0 %v1328_v26  ;;  %1207 = vmatpush3.bf16.msra.mxu1 (%p337_p12), %v1337_v45  ;;  %v475_v13 = vld [vmem:[#allocation2] sm:$0xff] (%p337_p12) }
 0x1e0   : > { %1170 = vmatprep.subr.bf16.mxu0 %v1748_v23  ;;  %1208 = vmatprep.subr.bf16.mxu1 (%p337_p12), %v1746_v0 }
 0x1e3   : > { %1171 = vmatpush3.bf16.msra.mxu0 %v1329_v27  ;;  %1209 = vmatpush3.bf16.msra.mxu1 (%p337_p12), %v1339_v47 }
 0x1e4   : > { %1172 = vmatprep.subr.bf16.mxu0 %v1748_v23  ;;  %1210 = vmatprep.subr.bf16.mxu1 (%p337_p12), %v1746_v0 }
 0x1e7   : > { %1173 = vmatpush3.bf16.msra.mxu0 %v1330_v28  ;;  %1211 = vmatpush3.bf16.msra.mxu1 (%p337_p12), %v1341_v49 }
 0x1e8   : > { %1174 = vmatprep.subr.bf16.mxu0 %v1748_v23  ;;  %1212 = vmatprep.subr.bf16.mxu1 (%p337_p12), %v1746_v0 }
 0x1eb   : > { %1175 = vmatpush3.bf16.msra.mxu0 %v1331_v29  ;;  %1213 = vmatpush3.bf16.msra.mxu1 (%p337_p12), %v1343_v51 }
 0x1ec   : > { %1176 = vmatprep.subr.bf16.mxu0 %v1748_v23  ;;  %1214 = vmatprep.subr.bf16.mxu1 (%p337_p12), %v1746_v0 }
 0x1ef   : > { %1177 = vmatpush3.bf16.msra.mxu0 %v1332_v30  ;;  %1215 = vmatpush3.bf16.msra.mxu1 (%p337_p12), %v1345_v55 }
 0x1f0   : > { %1178 = vmatprep.subr.bf16.mxu0 %v1748_v23  ;;  %1216 = vmatprep.subr.bf16.mxu1 (%p337_p12), %v1746_v0 }
 0x1f3   : > { %1179 = vmatpush3.bf16.msra.mxu0 %v1333_v31  ;;  %1217 = vmatpush3.bf16.msra.mxu1 (%p337_p12), %v1347_v58 }
 0x1f4   :  { %1184 = vmatprep.subr.bf16.mxu0 (%p337_p12), %v1746_v0  ;;  %1218 = vmatprep.subr.bf16.mxu1 (%p337_p12), %v1746_v0 }
 0x1f6   : > { %1181 = vmatmul.mubr.bf16.vlgmr.msra.gmra.mrb[0].mxu0 %v2033_v6 }
 0x1f7   :  { %1200 = vmatprep.mubr.msk.bf16.mxu0 (%p337_p12), %vm1747_vm0, %v1746_v0  ;;  %1185 = vmatpush3.bf16.msra.mxu0 (%p337_p12), %v1334_v42 }
 0x1f8   :  { %1186 = vmatprep.subr.bf16.mxu0 (%p337_p12), %v1746_v0  ;;  %1219 = vmatpush3.bf16.msra.mxu1 (%p337_p12), %v1349_v60 }
 0x1fb   :  { %1187 = vmatpush3.bf16.msra.mxu0 (%p337_p12), %v1336_v44  ;;  %1221 = vmatmul.mubr.bf16.vlgmr.msra.gmra.mrb[0].mxu1 (%p337_p12), %v2025_v1 }
 0x1fc   :  { %1188 = vmatprep.subr.bf16.mxu0 (%p337_p12), %v1746_v0 }
 0x1ff   :  { %1189 = vmatpush3.bf16.msra.mxu0 (%p337_p12), %v1338_v46 }
 0x200   :  { %1190 = vmatprep.subr.bf16.mxu0 (%p337_p12), %v1746_v0 }
 0x203   :  { %1191 = vmatpush3.bf16.msra.mxu0 (%p337_p12), %v1340_v48 }
 0x204   :  { %1192 = vmatprep.subr.bf16.mxu0 (%p337_p12), %v1746_v0 }
 0x207   :  { %1193 = vmatpush3.bf16.msra.mxu0 (%p337_p12), %v1342_v50 }
 0x208   :  { %1194 = vmatprep.subr.bf16.mxu0 (%p337_p12), %v1746_v0 }
 0x20b   :  { %1195 = vmatpush3.bf16.msra.mxu0 (%p337_p12), %v1344_v54 }
 0x20c   :  { %1196 = vmatprep.subr.bf16.mxu0 (%p337_p12), %v1746_v0 }
 0x20f   :  { %1197 = vmatpush3.bf16.msra.mxu0 (%p337_p12), %v1346_v57 }
 0x210   :  { %1198 = vmatprep.subr.bf16.mxu0 (%p337_p12), %v1746_v0 }
 0x213   :  { %1199 = vmatpush3.bf16.msra.mxu0 (%p337_p12), %v1348_v59 }
 0x2c9   : > { %v443_v32 = vpop.f32.mrb[0].mxu0 }
 0x2ca   : > { %v1182_v33 = vpop.f32.mrb[1].mxu0  ;;  %v449_v34 = vmul.f32 %v443_v32, %v212_v2 }
 0x2cb   : > { %v446_v35 = vpop.f32.mrb[2].mxu0 }
 0x2cc   : > { %v1183_v36 = vpop.f32.mrb[3].mxu0  ;;  %450 = vadd.xlane.f32.xlu0 %v449_v34 }
 0x2ce   :  { %v688_v5 = vpop.f32.mrb[0].mxu1 (%p337_p12) }
 0x2cf   :  { %v2084_v8 = vadd.f32 (%p337_p12), %v1056_v4, %v688_v5  ;;  %v1222_v9 = vpop.f32.mrb[1].mxu1 (%p337_p12) }
 0x2d0   :  { %v691_v10 = vpop.f32.mrb[2].mxu1 (%p337_p12) }
 0x2d1   :  { %v694_v11 = vmax.f32 (%p337_p12), %v2084_v8, 0.0  ;;  %v1223_v12 = vpop.f32.mrb[3].mxu1 (%p337_p12) }
 0x358   :  { %339 = sbr.rel (!%p337_p12) target bundleno = 468 (0x1d4), region = 164 }
 0x359   : > { %v451_v39 = vpop.xlane.xlu0 %450 }
 0x35a   : > { %v456_v40 = vmul.f32 %v1045_v38, %v451_v39 }
 0x35c   : > { %v457_v41 = vadd.f32 %v1718_v22, %v456_v40  }
 0x35e   : > { %v1717_v22 = vmov %v457_v41   ;;  %v466_v53 = vadd.f32 (%p337_p12), %v1046_v52, %v457_v41 }
 0x360   :  { %v1047_v56 = vmul.f32 -1.442695, %v466_v53 }
 0x362   :  { %1350 = vpow2.f32 %v1047_v56 }
 0x36c   :  { %v1351_v61 = vpop.eup %1350 }
 0x36d   :  { %v470_v62 = vadd.f32 1.0, %v1351_v61 }
 0x36f   :  { %1352 = vrcp.f32 %v470_v62 }
 0x379   :  { %v1353_v63 = vpop.eup %1352 }
 0x37a   :  { %v473_v2 = vmul.f32 %v1353_v63, %v332_v20 }
 0x37c   :  { %v474_v3 = vpack.c.bf16 %v473_v2, %v473_v2 }
 0x37e   :  { %1201 = vmatmul.mubr.bf16.vlgmr.msra.gmra.mrb[0].mxu0 %v474_v3 }
 0x451   :  { %v574_v15 = vpop.f32.mrb[0].mxu0 }
 0x452   :  { %v580_v16 = vadd.f32 %v574_v15, %v475_v13  ;;  %v1202_v18 = vpop.f32.mrb[1].mxu0 }
 0x453   :  { %v577_v19 = vpop.f32.mrb[2].mxu0 }
 0x454   :  { %581 = vst [vmem:[#allocation2] sm:$0xff] %v580_v16  ;;  %v1203_v21 = vpop.f32.mrb[3].mxu0 }
 0x455 LB: > { %v1750_v20 = vmov 0.0   ;;  %vm1751_vm3 = vmmov 0   ;;  %s1089_s21 = sshll.u32 %s1730_s2, 6  ;;  %v812_v35 = vstv %s1730_s2  ;;  %s700_s2 = sadd.s32 1, %s1730_s2   ;;  %s1730_s2 = sphi %s2087_s2, %s700_s2   ;;  %v1726_v17 = vphi %v1724_v17, %v1725_v17  }
 0x456   : > { %1224 = vmatprep.subr.bf16.mxu0 %v1750_v20  ;;  %1240 = vmatprep.mubr.msk.bf16.mxu0 %vm1751_vm3, %v1750_v20  ;;  %s704_s25 = scalar_lea.vmem [#allocation18], %s1089_s21  ;;  %vm813_vm4 = vcmp.eq.s32.totalorder %v2042_v14, %v812_v35  ;;  %p697_p13 = scmp.ge.s32.totalorder %s700_s2, 128  }
 0x457   : > { %v1354_v22 = vld [vmem:[%s704_s25] sm:$0xff]   ;;  %v1355_v23 = vld [vmem:[%s704_s25 + $0x8] sm:$0xff]   ;;  %v1356_v24 = vld [vmem:[%s704_s25 + $0x10] sm:$0xff]   ;;  %v1075_v36 = vsel %vm813_vm4, 1.0, %v1750_v20  ;;  %s1752_s5 = smov (%p697_p13), [#allocation24]  }
 0x458   : > { %1225 = vmatpush3.bf16.msra.mxu0 %v1354_v22  ;;  %v1357_v25 = vld [vmem:[%s704_s25 + $0x18] sm:$0xff]   ;;  %v1358_v26 = vld [vmem:[%s704_s25 + $0x20] sm:$0xff]   ;;  %v1359_v27 = vld [vmem:[%s704_s25 + $0x28] sm:$0xff]   ;;  %s973_s27 = sshll.u32 (%p697_p13), %s1752_s5, 4  ;;  %s974_s27 = int_to_ptr.vmem [resolvable:$true] %s973_s27 }
 0x459   : > { %1226 = vmatprep.subr.bf16.mxu0 %v1750_v20  ;;  %v1360_v28 = vld [vmem:[%s704_s25 + $0x30] sm:$0xff]   ;;  %v1361_v29 = vld [vmem:[%s704_s25 + $0x38] sm:$0xff]   ;;  %v1364_v42 = vld [vmem:[#allocation21 + $0x10] sm:$0xff] (%p697_p13)   ;;  %s1638_s6 = scalar_lea.vmem (%p697_p13), %s974_s27, 128  ;;  %p1643_p1 = scmp.lt.s32.totalorder (%p697_p13), %s974_s27, %s974_s27 }
 0x45a   :  { %v1362_v40 = vld [vmem:[#allocation21] sm:$0xff] (%p697_p13)   ;;  %v1363_v41 = vld [vmem:[#allocation21 + $0x8] sm:$0xff] (%p697_p13)   ;;  %v1076_v43 = vld [vmem:[#allocation19] ss:$0 sm:$0xff] (%p697_p13)  ;;  %p1639_p0 = scmp.ne.s32.totalorder (%p697_p13), %s974_s27, %s1638_s6  ;;  %p1644_p2 = scmp.lt.s32.totalorder (%p697_p13), %s1638_s6, %s1638_s6 }
 0x45b   :  { %v1365_v45 = vld [vmem:[#allocation21 + $0x18] sm:$0xff] (%p697_p13)   ;;  %v1366_v6 = vld [vmem:[#allocation21 + $0x20] sm:$0xff] (%p697_p13)   ;;  %v1368_v14 = vld [vmem:[#allocation21 + $0x30] sm:$0xff] (%p697_p13)  }
 0x45c   : > { %1227 = vmatpush3.bf16.msra.mxu0 %v1355_v23  ;;  %v1369_v48 = vld [vmem:[#allocation21 + $0x38] sm:$0xff] (%p697_p13)   ;;  %v945_v52 = vld [vmem:[#allocation2] sm:$0xff] (%p697_p13)  ;;  %p1645_p3 = por (%p697_p13), %p1644_p2, %p1643_p1 }
 0x45d   : > { %1228 = vmatprep.subr.bf16.mxu0 %v1750_v20  ;;  %v1086_v53 = vld [vmem:[#allocation13] ss:$0 sm:$0xff] (%p697_p13) }
 0x45e   :  { %v953_v54 = vadd.f32 (%p697_p13), %v1086_v53, %v945_v52  ;;  %p1646_p4 = pnand (%p697_p13), %p1645_p3, %p1639_p0 }
 0x460   : > { %1229 = vmatpush3.bf16.msra.mxu0 %v1356_v24  ;;  %v954_v55 = vmax.f32 (%p697_p13), %v953_v54, 0.0 }
 0x461   : > { %1230 = vmatprep.subr.bf16.mxu0 %v1750_v20 }
 0x462   :  { %955 = vst [vmem:[#allocation24] sm:$0xff] (%p697_p13), %v954_v55 }
 0x464   : > { %1231 = vmatpush3.bf16.msra.mxu0 %v1357_v25 }
 0x465   : > { %1232 = vmatprep.subr.bf16.mxu0 %v1750_v20 }
 0x468   : > { %1233 = vmatpush3.bf16.msra.mxu0 %v1358_v26 }
 0x469   : > { %1234 = vmatprep.subr.bf16.mxu0 %v1750_v20 }
 0x46c   : > { %1235 = vmatpush3.bf16.msra.mxu0 %v1359_v27 }
 0x46d   : > { %1236 = vmatprep.subr.bf16.mxu0 %v1750_v20 }
 0x470   : > { %1237 = vmatpush3.bf16.msra.mxu0 %v1360_v28 }
 0x471   : > { %1238 = vmatprep.subr.bf16.mxu0 %v1750_v20 }
 0x474   : > { %1239 = vmatpush3.bf16.msra.mxu0 %v1361_v29 }
 0x475   :  { %1244 = vmatprep.subr.bf16.mxu0 (%p697_p13), %v1746_v0 }
 0x477   : > { %1241 = vmatmul.mubr.bf16.vlgmr.msra.gmra.mrb[0].mxu0 %v2025_v1 }
 0x478   :  { %1260 = vmatprep.mubr.msk.bf16.mxu0 (%p697_p13), %vm1747_vm0, %v1746_v0  ;;  %1245 = vmatpush3.bf16.msra.mxu0 (%p697_p13), %v1362_v40 }
 0x479   :  { %1246 = vmatprep.subr.bf16.mxu0 (%p697_p13), %v1746_v0 }
 0x47c   :  { %1247 = vmatpush3.bf16.msra.mxu0 (%p697_p13), %v1363_v41 }
 0x47d   :  { %1248 = vmatprep.subr.bf16.mxu0 (%p697_p13), %v1746_v0 }
 0x480   :  { %1249 = vmatpush3.bf16.msra.mxu0 (%p697_p13), %v1364_v42 }
 0x481   :  { %1250 = vmatprep.subr.bf16.mxu0 (%p697_p13), %v1746_v0 }
 0x484   :  { %1251 = vmatpush3.bf16.msra.mxu0 (%p697_p13), %v1365_v45 }
 0x485   :  { %1252 = vmatprep.subr.bf16.mxu0 (%p697_p13), %v1746_v0 }
 0x488   :  { %1253 = vmatpush3.bf16.msra.mxu0 (%p697_p13), %v1366_v6 }
 0x489   :  { %1254 = vmatprep.subr.bf16.mxu0 (%p697_p13), %v1746_v0 }
 0x54a   : > { %v803_v30 = vpop.f32.mrb[0].mxu0 }
 0x54b   : > { %v1242_v31 = vpop.f32.mrb[1].mxu0  ;;  %v809_v32 = vmul.f32 %v803_v30, %v211_v7  ;;  %v1367_v7 = vld [vmem:[#allocation21 + $0x28] sm:$0xff] (%p697_p13)  }
 0x54c   : > { %v806_v33 = vpop.f32.mrb[2].mxu0  ;;  %1255 = vmatpush3.bf16.msra.mxu0 (%p697_p13), %v1367_v7 }
 0x54d   : > { %v1243_v34 = vpop.f32.mrb[3].mxu0  ;;  %810 = vadd.xlane.f32.xlu0 %v809_v32  ;;  %1256 = vmatprep.subr.bf16.mxu0 (%p697_p13), %v1746_v0 }
 0x550   :  { %1257 = vmatpush3.bf16.msra.mxu0 (%p697_p13), %v1368_v14 }
 0x551   :  { %1258 = vmatprep.subr.bf16.mxu0 (%p697_p13), %v1746_v0 }
 0x554   :  { %1259 = vmatpush3.bf16.msra.mxu0 (%p697_p13), %v1369_v48 }
 0x5d9   :  { %699 = sbr.rel (!%p697_p13) target bundleno = 1109 (0x455), region = 175 }
 0x5da   : > { %v811_v37 = vpop.xlane.xlu0 %810 }
 0x5db   : > { %v816_v38 = vmul.f32 %v1075_v36, %v811_v37 }
 0x5dd   : > { %v817_v39 = vadd.f32 %v1726_v17, %v816_v38  }
 0x5df   : > { %v1725_v17 = vmov %v817_v39   ;;  %v826_v44 = vadd.f32 (%p697_p13), %v1076_v43, %v817_v39 }
 0x5e1   :  { %v1077_v1 = vmul.f32 -1.442695, %v826_v44 }
 0x5e3   :  { %1370 = vpow2.f32 %v1077_v1 }
 0x5ed   :  { %v1371_v46 = vpop.eup %1370 }
 0x5ee   :  { %v830_v47 = vadd.f32 1.0, %v1371_v46 }
 0x5f0   :  { %1372 = vrcp.f32 %v830_v47 }
 0x5fa   :  { %v1373_v49 = vpop.eup %1372 }
 0x5fb   :  { %v833_v50 = vmul.f32 %v1373_v49, %v694_v11 }
 0x5fd   :  { %v834_v51 = vpack.c.bf16 %v833_v50, %v833_v50 }
 0x5ff   :  { %1261 = vmatmul.mubr.bf16.vlgmr.msra.gmra.mrb[0].mxu0 %v834_v51 }
 0x600   :  { %1649 = shalt.err (!%p1646_p4)
}
 0x601   :  { %s1650_s10 = scalar_lea.hbm %s2151_s14, 128 }
 0x602   :  { %p1651_p5 = scmp.ne.s32.totalorder %s2151_s14, %s1650_s10  ;;  %p1654_p6 = scmp.lt.u32.totalorder %s1650_s10, %s2151_s14 }
 0x604   :  { %p1656_p7 = pnand %p1654_p6, %p1651_p5 }
 0x606   :  { %1659 = shalt.err (!%p1656_p7)
}
 0x607   :  { %976 = dma.vmem_to_hbm [thread:$0]  %s974_s27, 128, %s2151_s14, [#allocation6]   ;;  %v835_v0 = vld [vmem:[#allocation3] sm:$0xff]  ;;  %v1087_v57 = vld [vmem:[#allocation22] ss:$0 sm:$0xff] }
 0x608   :  { %s1753_s4 = smov [#allocation25]  }
 0x609   :  { %s983_s16 = sshll.u32 %s1753_s4, 4  ;;  %s984_s16 = int_to_ptr.vmem [resolvable:$true] %s983_s16 }
 0x60a   :  { %s1660_s20 = scalar_lea.vmem %s984_s16, 128  ;;  %p1665_p9 = scmp.lt.s32.totalorder %s984_s16, %s984_s16 }
 0x60b   :  { %p1661_p8 = scmp.ne.s32.totalorder %s984_s16, %s1660_s20  ;;  %p1666_p10 = scmp.lt.s32.totalorder %s1660_s20, %s1660_s20 }
 0x60d   :  { %p1667_p11 = por %p1666_p10, %p1665_p9 }
 0x60f   :  { %p1668_p12 = pnand %p1667_p11, %p1661_p8 }
 0x6d2   :  { %v934_v56 = vpop.f32.mrb[0].mxu0 }
 0x6d3   :  { %v940_v58 = vadd.f32 %v934_v56, %v835_v0  ;;  %v1262_v59 = vpop.f32.mrb[1].mxu0 }
 0x6d4   :  { %v937_v60 = vpop.f32.mrb[2].mxu0 }
 0x6d5   :  { %941 = vst [vmem:[#allocation3] sm:$0xff] %v940_v58  ;;  %v1263_v61 = vpop.f32.mrb[3].mxu0  ;;  %v964_v62 = vadd.f32 %v1087_v57, %v940_v58 }
 0x6d7   :  { %v965_v63 = vmax.f32 %v964_v62, 0.0 }
 0x6d9   :  { %966 = vst [vmem:[#allocation25] sm:$0xff] %v965_v63 }
 0x6da   :  { %1671 = shalt.err (!%p1668_p12)
}
 0x6db   :  { %s1672_s22 = scalar_lea.hbm %s2152_s15, 128 }
 0x6dc   :  { %p1673_p13 = scmp.ne.s32.totalorder %s2152_s15, %s1672_s22  ;;  %p1676_p0 = scmp.lt.u32.totalorder %s1672_s22, %s2152_s15 }
 0x6de   :  { %p1678_p1 = pnand %p1676_p0, %p1673_p13 }
 0x6e0   :  { %1681 = shalt.err (!%p1678_p1)
}
 0x6e1   :  { %986 = dma.vmem_to_hbm [thread:$0]  %s984_s16, 128, %s2152_s15, [#allocation26]  }
 0x6e2   :  { %1712 = dma.done.wait [#allocation6], 128  }
 0x6e3   :  { %1713 = vsyncadd [#allocation6], 4294967168 }
 0x6e4   :  { %1714 = dma.done.wait [#allocation26], 128  }
 0x6e5   :  { %1715 = vsyncadd [#allocation26], 4294967168 }
 0x6e6   :  { %993 = vsyncpa [#allocation5], 1 }
 0x6e7   :  { %994 = vsyncpa [#allocation8], 1 }
 0x6e8   :  { %995 = vsyncpa [#allocation11], 1 }
 0x6e9   :  { %996 = vsyncpa [#allocation14], 1 }
 0x6ea   :  { %997 = vsyncpa [#allocation17], 1 }
 0x6eb   :  { %998 = vsyncpa [#allocation20], 1 }
 0x6ec   :  { %999 = vsyncpa [#allocation23], 1 }
 0x6ed   :  { %1000 = vsyncpa [#allocation6], 1 }
 0x6ee   :  { %1001 = vsyncpa [#allocation26], 1 }

</bundles_post_ra>
